<compile_context>
chip_gen: v7x
topology: tpu7x:2x2x1
jax: 0.10.0
libtpu: 0.0.40
codegen_flags: <defaults>
</compile_context>

<pallas_src>
import functools

import numpy as np
import jax
import jax.numpy as jnp
from jax import lax
from jax.experimental import pallas as pl
from jax.experimental.pallas import tpu as pltpu

_EPS = 1e-8
# Total pipelined VMEM footprint target: safe on every generation
# (v5e/v6e: 128 MiB physical; v7x: 64 MiB physical / 32 MiB scoped default).
_DEFAULT_VMEM_BUDGET = 24 * 1024 * 1024
_VMEM_LIMIT_BYTES = 48 * 1024 * 1024  # raised scoped limit, still < v7x physical


def _finalize(s, ss, total_t, out_dtype):
    """mean ++ std from running sum / sum-of-squares (f32, [b, D] each)."""
    inv_t = 1.0 / float(total_t)
    # torch.var default is unbiased (ddof=1); T == 1 intentionally yields NaN std,
    # matching torch semantics.
    inv_tm1 = (1.0 / float(total_t - 1)) if total_t > 1 else float("nan")
    mean = s * inv_t
    # One-pass variance; clamp at 0 so catastrophic cancellation can't make it
    # slightly negative (sqrt would otherwise return NaN).
    var = jnp.maximum((ss - s * mean) * inv_tm1, 0.0)
    std = jnp.sqrt(var + _EPS)
    return jnp.concatenate([mean, std], axis=-1).astype(out_dtype)  # [b, 2*D]


def _tstp_full_kernel(x_ref, out_ref, *, total_t):
    """Fast path: whole time axis in one block; no reduction grid axis."""
    x = x_ref[...].astype(jnp.float32)            # [b_blk, D, T]
    s = jnp.sum(x, axis=-1)                       # [b_blk, D]  (XLU lane reduce)
    ss = jnp.sum(x * x, axis=-1)
    stats = _finalize(s, ss, total_t, out_ref.dtype)
    out_ref[...] = stats[:, None, :]              # [b_blk, 1, 2*D] lane-dense store


def _tstp_stream_kernel(x_ref, out_ref, acc_ref, *, total_t, t_blk, d, ragged):
    """Streaming path: running sum / sum-of-squares across time tiles."""
    t = pl.program_id(1)

    @pl.when(t == 0)
    def _():
        acc_ref[...] = jnp.zeros_like(acc_ref)

    x = x_ref[...].astype(jnp.float32)            # [b_blk, D, t_blk]
    if ragged:
        # Last tile may read past the end of the array; mask invalid columns
        # before any arithmetic.
        col = lax.broadcasted_iota(jnp.int32, x.shape, dimension=2)
        x = jnp.where(t * t_blk + col < total_t, x, 0.0)

    # Merged accumulator: sum in lanes [:D], sum-of-squares in lanes [D:].
    part = jnp.concatenate([jnp.sum(x, axis=-1), jnp.sum(x * x, axis=-1)], axis=-1)
    acc_ref[...] += part

    @pl.when(t == pl.num_programs(1) - 1)
    def _():
        acc = acc_ref[...]
        stats = _finalize(acc[:, :d], acc[:, d:], total_t, out_ref.dtype)
        out_ref[...] = stats[:, None, :]


def _pick_tiles(B, D, T, itemsize, budget):
    """Pick (b_blk, t_blk) under a VMEM byte budget (2x-buffered I/O + scratch)."""

    def bytes_needed(b, t):
        in_b = 2 * b * D * t * itemsize       # double-buffered input block
        out_b = 2 * b * 2 * D * itemsize      # double-buffered output block
        scr_b = b * 2 * D * 4                 # merged f32 accumulator
        return in_b + out_b + scr_b

    # Batch candidates: divisors of B, capped at B // 2 so the "parallel" grid
    # axis has >= 2 steps (keeps both v7x TensorCores busy); largest first.
    max_b = max(1, B // 2)
    b_cands = [b for b in range(max_b, 0, -1) if B % b == 0]

    # Fast path: whole T in a single block (no reduction grid axis).
    for b in b_cands:
        if bytes_needed(b, T) <= budget:
            return b, T

    # Streaming path: largest 128-multiple time tile that fits (ragged OK).
    for t in (4096, 2048, 1024, 512, 256, 128):
        if t >= T:
            continue
        for b in b_cands:
            if bytes_needed(b, t) <= budget:
                return b, t

    # TODO(synk): also tile D for extremely large feature dims (D >~ 24k f32).
    return 1, min(T, 128)


def temporal_stats_pool(x, *, vmem_budget_bytes=_DEFAULT_VMEM_BUDGET):
    """JAX/Pallas equivalent of TemporalStatsPool.forward.

    x: [B, ..., T]  ->  [B, 2 * prod(x.shape[1:-1])]  (mean ++ std over last axis)
    """
    assert x.ndim >= 3, "TSTP expects [B, ..., T] with at least one feature dim"
    B = x.shape[0]
    T = x.shape[-1]
    D = int(np.prod(x.shape[1:-1]))
    x3 = x.reshape(B, D, T)                       # flatten(start_dim=1) pre-applied
    itemsize = np.dtype(x.dtype).itemsize

    b_blk, t_blk = _pick_tiles(B, D, T, itemsize, vmem_budget_bytes)

    cost = pl.CostEstimate(
        flops=3 * B * D * T,                      # sum, square, sum-of-squares
        transcendentals=B * D,                    # one sqrt per output feature
        bytes_accessed=B * D * T * itemsize + B * 2 * D * itemsize,
    )
    # Output kept 3-D ([B, 1, 2*D]): its last-two block dims always equal the
    # full array dims, so stores stay unmasked/lane-dense for any b_blk.
    out_shape = jax.ShapeDtypeStruct((B, 1, 2 * D), x.dtype)

    if t_blk >= T:
        kernel = functools.partial(_tstp_full_kernel, total_t=T)
        out = pl.pallas_call(
            kernel,
            out_shape=out_shape,
            grid_spec=pltpu.PrefetchScalarGridSpec(
                num_scalar_prefetch=0,
                grid=(B // b_blk,),
                in_specs=[pl.BlockSpec((b_blk, D, T), lambda b: (b, 0, 0))],
                out_specs=pl.BlockSpec((b_blk, 1, 2 * D), lambda b: (b, 0, 0)),
            ),
            compiler_params=pltpu.CompilerParams(
                dimension_semantics=("parallel",),
                vmem_limit_bytes=_VMEM_LIMIT_BYTES),
            cost_estimate=cost,
        )(x3)
    else:
        n_t = pl.cdiv(T, t_blk)
        ragged = (T % t_blk) != 0
        kernel = functools.partial(
            _tstp_stream_kernel, total_t=T, t_blk=t_blk, d=D, ragged=ragged)
        out = pl.pallas_call(
            kernel,
            out_shape=out_shape,
            grid_spec=pltpu.PrefetchScalarGridSpec(
                num_scalar_prefetch=0,
                grid=(B // b_blk, n_t),
                in_specs=[pl.BlockSpec((b_blk, D, t_blk), lambda b, t: (b, 0, t))],
                out_specs=pl.BlockSpec((b_blk, 1, 2 * D), lambda b, t: (b, 0, 0)),
                scratch_shapes=[pltpu.VMEM((b_blk, 2 * D), jnp.float32)],
            ),
            compiler_params=pltpu.CompilerParams(
                dimension_semantics=("parallel", "arbitrary"),
                vmem_limit_bytes=_VMEM_LIMIT_BYTES),
            cost_estimate=cost,
        )(x3)

    return out.reshape(B, 2 * D)


def _ref_tstp(x):
    """Pure-JAX reference (torch.var default unbiased => ddof=1)."""
    B = x.shape[0]
    T = x.shape[-1]
    D = int(np.prod(x.shape[1:-1]))
    xr = x.reshape(B, D, T)
    mean = xr.mean(axis=-1)
    std = jnp.sqrt(xr.var(axis=-1, ddof=1) + _EPS)
    return jnp.concatenate([mean, std], axis=1)


if __name__ == "__main__":
    key = jax.random.PRNGKey(0)
    # x-vector style features: [B, C, F, T]; D = C*F = 64 -> 128-lane-dense output.
    B, C, F, T = 2, 16, 4, 384
    x = jax.random.normal(key, (B, C, F, T), dtype=jnp.float32)

    # Fast path: full-T block, purely "parallel" grid (2 steps -> both v7x TCs).
    stats = temporal_stats_pool(x)
    jax.block_until_ready(stats)
    ref = _ref_tstp(x)
    assert stats.shape == (B, 2 * C * F)
    assert stats.dtype == x.dtype
    assert jnp.allclose(stats, ref, rtol=1e-4, atol=1e-4)

    # Streaming path: tiny VMEM budget forces time tiling + ragged (masked) last tile.
    x2 = jax.random.normal(jax.random.PRNGKey(0), (B, C, F, 300), dtype=jnp.float32)
    stats2 = temporal_stats_pool(x2, vmem_budget_bytes=96 * 1024)
    jax.block_until_ready(stats2)
    assert jnp.allclose(stats2, _ref_tstp(x2), rtol=1e-4, atol=1e-4)

    print("KERNEL_OK")
</pallas_src>

<mosaic_0001>
module attributes {stable_mosaic.version = 11 : i64} {
  func.func @_tstp_full_kernel(%arg0: i32, %arg1: memref<1x64x384xf32, #tpu.memory_space<vmem>>, %arg2: memref<1x1x128xf32, #tpu.memory_space<vmem>>) attributes {dimension_semantics = [#tpu.dimension_semantics<parallel>], iteration_bounds = array<i64: 2>, scalar_prefetch = 0 : i64, scratch_operands = 0 : i64, tpu.core_type = #tpu.core_type<tc>, window_params = [{transform_indices = @transform_0, window_bounds = array<i64: 1, 64, 384>}, {transform_indices = @transform_1, window_bounds = array<i64: 1, 1, 128>}]} {
    %c0 = arith.constant 0 : index
    %c0_0 = arith.constant 0 : index
    %c0_1 = arith.constant 0 : index
    %0 = vector.load %arg1[%c0, %c0_0, %c0_1] : memref<1x64x384xf32, #tpu.memory_space<vmem>>, vector<1x64x384xf32>
    %cst = arith.constant dense<0.000000e+00> : vector<1x64xf32>
    %1 = vector.multi_reduction <add>, %0, %cst [2] : vector<1x64x384xf32> to vector<1x64xf32>
    %2 = arith.mulf %0, %0 : vector<1x64x384xf32>
    %cst_2 = arith.constant dense<0.000000e+00> : vector<1x64xf32>
    %3 = vector.multi_reduction <add>, %2, %cst_2 [2] : vector<1x64x384xf32> to vector<1x64xf32>
    %cst_3 = arith.constant 0.00260416674 : f32
    %4 = vector.broadcast %cst_3 : f32 to vector<1x64xf32>
    %5 = arith.mulf %1, %4 : vector<1x64xf32>
    %6 = arith.mulf %1, %5 : vector<1x64xf32>
    %7 = arith.subf %3, %6 : vector<1x64xf32>
    %cst_4 = arith.constant 0.0026109661 : f32
    %8 = vector.broadcast %cst_4 : f32 to vector<1x64xf32>
    %9 = arith.mulf %7, %8 : vector<1x64xf32>
    %cst_5 = arith.constant 0.000000e+00 : f32
    %10 = vector.broadcast %cst_5 : f32 to vector<1x64xf32>
    %11 = arith.maximumf %9, %10 : vector<1x64xf32>
    %cst_6 = arith.constant 9.99999993E-9 : f32
    %12 = vector.broadcast %cst_6 : f32 to vector<1x64xf32>
    %13 = arith.addf %11, %12 : vector<1x64xf32>
    %14 = math.sqrt %13 : vector<1x64xf32>
    %15 = tpu.concatenate %5, %14 in 1 : vector<1x64xf32>, vector<1x64xf32> -> vector<1x128xf32>
    %16 = vector.shape_cast %15 : vector<1x128xf32> to vector<1x1x128xf32>
    %c0_7 = arith.constant 0 : index
    %c0_8 = arith.constant 0 : index
    %c0_9 = arith.constant 0 : index
    %17 = vector.load %arg2[%c0_7, %c0_8, %c0_9] : memref<1x1x128xf32, #tpu.memory_space<vmem>>, vector<1x1x128xf32>
    tpu.vector_store %arg2[%c0_7, %c0_8, %c0_9], %16 {strides = array<i32>} : memref<1x1x128xf32, #tpu.memory_space<vmem>>, vector<1x1x128xf32>,
    return
  }
  func.func @transform_0(%arg0: i32) -> (i32, i32, i32) {
    %c0_i32 = arith.constant 0 : i32
    %c0_i32_0 = arith.constant 0 : i32
    %c0_i32_1 = arith.constant 0 : i32
    return %arg0, %c0_i32, %c0_i32_0 : i32, i32, i32
  }
  func.func @transform_1(%arg0: i32) -> (i32, i32, i32) {
    %c0_i32 = arith.constant 0 : i32
    %c0_i32_0 = arith.constant 0 : i32
    %c0_i32_1 = arith.constant 0 : i32
    return %arg0, %c0_i32, %c0_i32_0 : i32, i32, i32
  }
}

</mosaic_0001>

<bundles_post_ra>
// kernel: tpu_custom_call.1
= control target key start
LH: loop header
LB: loop body
LE: loop exit
PB: predicated region body
PF: predicated region fallthrough
CT: control target
= control target key end

     0   :  { %6 = vsyncpa [#allocation3], 0  ;;  %s1151_s0 = inlined_call_operand.hbm [shape: f32[2,64,384], index: 0, kind: input, shape index: {}]   ;;  %s1152_s1 = inlined_call_operand.hbm [shape: f32[2,1,128], index: 1, kind: output, shape index: {}]  }
   0x1   :  { %8 = vsyncpa [#allocation3 + $0x1], 0 }
   0x2   :  { %9 = vsyncpa [#allocation4], 0 }
   0x3   :  { %11 = vsyncpa [#allocation4 + $0x1], 0  ;;  %s746_s6 = smov 0   ;;  %s748_s7 = smov 0  }
   0x4   :  { %s750_s8 = smov 0   ;;  %s752_s9 = smov 0  }
   0x5 LB: > { %s767_s10 = sadd.s32 4294967295, %s730_s9   ;;  %s559_s11 = sadd.s32 4294967294, %s730_s9   ;;  %s730_s9 = sphi %s752_s9, %s1164_s9   ;;  %s726_s8 = sphi %s750_s8, %s1163_s8   ;;  %s722_s7 = sphi %s748_s7, %s1162_s7   ;;  %s718_s6 = sphi %s746_s6, %s1161_s6  }
   0x6   : > { %s771_s12 = sadd.s32 1, %s730_s9   ;;  %s24_s13 = sadd.s32 1, %s726_s8 }
   0x7   : > { %s21_s14 = ssub.s32 %s730_s9, %s771_s12  ;;  %p31_p0 = scmp.ne.s32.totalorder %s726_s8, %s722_s7 }
   0x8   : > { %p22_p1 = scmp.eq.s32.totalorder %s21_s14, 0  ;;  %p32_p2 = scmp.eq.s32.totalorder %s730_s9, 0 }
   0x9   : > { %p37_p3 = scmp.ne.s32.totalorder %s722_s7, %s718_s6  ;;  %p38_p4 = scmp.eq.s32.totalorder %s767_s10, 0 }
   0xa   : > { %s783_s15 = scalar_select %p22_p1, %s726_s8, %s24_s13  }
   0xb   : > { %p33_p5 = por %p32_p2, %p31_p0  ;;  %p785_p6 = por %p38_p4, %p37_p3 }
   0xc   : > { %p61_p7 = scmp.eq.s32.totalorder %s767_s10, 1  ;;  %p67_p8 = scmp.eq.s32.totalorder %s559_s11, 1 }
   0xd   : > { %p582_p10 = scmp.lt.s32.totalorder %s730_s9, 2  ;;  %s87_s19 = sand.u32 1, %s726_s8  }
   0xe   : > { %p792_p11 = por %p61_p7, %p31_p0  ;;  %p796_p12 = por %p67_p8, %p37_p3 }
   0xf   : > { %s568_s20 = smul.u32 3072, %s730_s9  ;;  %p807_p13 = pnand %p582_p10, %p33_p5 }
  0x10   : > { %s1155_s17 = scalar_select %p792_p11, 1, 0 }
  0x11   : > { %s1156_s18 = scalar_select %p796_p12, 1, 0 }
  0x12   : > { %s567_s21 = smul.u32 192, %s87_s19  ;;  %s805_s24 = scalar_lea.hbm %s1151_s0, %s568_s20 }
  0x13   : > { %s813_s28 = scalar_lea.sflag [#allocation3], %s87_s19  ;;  %s634_s29 = scalar_lea.hbm %s805_s24, 3072 }
  0x14   : > { %s91_s26 = scalar_lea.vmem [#allocation2], %s567_s21  ;;  %p635_p0 = scmp.ne.s32.totalorder %s805_s24, %s634_s29 }
  0x15   : > { %s98_s27 = sshll.u32 %s91_s26, 4  ;;  %p636_p1 = pneg %p807_p13  ;;  %s811_s27 = int_to_ptr.vmem [resolvable:$true] %s98_s27 }
  0x16   : > { %s639_s3 = scalar_lea.hbm %s1151_s0, 6144  ;;  %p640_p4 = scmp.lt.u32.totalorder %s805_s24, %s1151_s0 }
  0x17   : > { %p637_p2 = pnand %p636_p1, %p635_p0  ;;  %p641_p5 = scmp.lt.u32.totalorder %s639_s3, %s634_s29 }
  0x18   : > { %p643_p8 = scmp.lt.u32.totalorder %s634_s29, %s805_s24 }
  0x19   : > { %p638_p3 = pneg %p637_p2  ;;  %p642_p7 = por %p641_p5, %p640_p4 }
  0x1b   : > { %p644_p10 = por %p643_p8, %p642_p7 }
  0x1d   : > { %p645_p9 = pnand %p644_p10, %p638_p3 }
  0x1f   : > { %648 = shalt.err (!%p645_p9)
}
  0x20   : > { %s649_s11 = scalar_lea.vmem %s811_s27, 3072  ;;  %s732_s13 = smov [#allocation2]  }
  0x21   : > { %p650_p0 = scmp.ne.s32.totalorder %s811_s27, %s649_s11  ;;  %s654_s14 = sshll.u32 %s732_s13, 4  ;;  %s655_s14 = int_to_ptr.vmem [resolvable:$false] %s654_s14 }
  0x22   : > { %s656_s19 = scalar_lea.vmem %s655_s14, 6144  ;;  %p657_p11 = scmp.lt.s32.totalorder %s811_s27, %s655_s14 }
  0x23   : > { %p652_p2 = pnand %p650_p0, %p636_p1  ;;  %p658_p4 = scmp.lt.s32.totalorder %s656_s19, %s649_s11 }
  0x25   : > { %p653_p12 = pneg %p652_p2  ;;  %p659_p5 = por %p658_p4, %p657_p11 }
  0x27   : > { %p660_p7 = pnand %p659_p5, %p653_p12 }
  0x29   : > { %663 = shalt.err (!%p660_p7)
}
  0x2a   : > { %s733_s20 = smov 384   ;;  %s734_s21 = smov 24  }
  0x2b   : > { %577 = dma.hbm_to_vmem [thread:$0]  (!%p807_p13), %s805_s24, 3072, %s811_s27, %s813_s28, %s733_s20, %s733_s20, %s734_s21  }
  0x2c   : > { %p563_p9 = scmp.ge.s32.totalorder %s730_s9, 1  ;;  %p106_p1 = scmp.lt.s32.totalorder %s730_s9, 3 }
  0x2e   : > { %p107_p3 = pnand %p563_p9, %p106_p1 }
  0x2f   : > { %s844_s22 = sand.u32 (!%p107_p3), 1, %s722_s7  }
  0x30   : > { %110 = sbr.rel (%p107_p3) target bundleno = 275 (0x113), region = 24  ;;  %s113_s26 = scalar_lea.sflag (!%p107_p3), [#allocation3], %s844_s22 }
  0x31   : > { %s569_s23 = smul.u32 (!%p107_p3), 192, %s844_s22 }
  0x33   : > { %s848_s29 = scalar_lea.vmem (!%p107_p3), [#allocation2], %s569_s23 }
  0x37   : > { %709 = dma.done.wait (%p785_p6), %s113_s26, 3072  }
  0x38   : > { %711 = vsyncadd (%p785_p6), %s113_s26, 4294964224  ;;  %v140_v0 = vld [vmem:[%s848_s29 + $0x30] sm:$0xff]  ;;  %v141_v1 = vld [vmem:[%s848_s29 + $0x38] sm:$0xff]  ;;  %vm369_vm0 = vcmask 130112   ;;  %vm376_vm1 = vcmask 195712   ;;  %vm383_vm2 = vcmask 261312  }
  0x39   : > { %v142_v2 = vld [vmem:[%s848_s29 + $0x40] sm:$0xff]  ;;  %v166_v3 = vadd.f32 %v141_v1, %v140_v0  ;;  %v135_v5 = vld [vmem:[%s848_s29 + $0x8] sm:$0xff]  ;;  %v136_v6 = vld [vmem:[%s848_s29 + $0x10] sm:$0xff]  ;;  %v196_v32 = vmul.f32 %v140_v0, %v140_v0  ;;  %v197_v33 = vmul.f32 %v141_v1, %v141_v1  ;;  %vm432_vm5 = vcmask 654912   ;;  %s564_s16 = sshll.u32 %s767_s10, 4  ;;  %s133_s24 = scalar_lea.vmem [#allocation5], %s844_s22 }
  0x3a   : > { %v134_v4 = vld [vmem:[%s848_s29] sm:$0xff]  ;;  %v143_v8 = vld [vmem:[%s848_s29 + $0x48] sm:$0xff]  ;;  %v144_v9 = vld [vmem:[%s848_s29 + $0x50] sm:$0xff]  ;;  %v191_v27 = vmul.f32 %v135_v5, %v135_v5  ;;  %v192_v37 = vmul.f32 %v136_v6, %v136_v6  ;;  %v198_v42 = vmul.f32 %v142_v2, %v142_v2  ;;  %vm390_vm6 = vcmask 326912   ;;  %s493_s25 = sshll.u32 %s133_s24, 4  ;;  %s1107_s30 = scalar_lea.hbm %s1152_s1, %s564_s16  ;;  %s1109_s25 = int_to_ptr.vmem [resolvable:$true] %s493_s25 }
  0x3b   : > { %v158_v7 = vadd.f32 %v135_v5, %v134_v4  ;;  %v145_v10 = vld [vmem:[%s848_s29 + $0x58] sm:$0xff]  ;;  %v167_v11 = vadd.f32 %v166_v3, %v142_v2  ;;  %v170_v12 = vadd.f32 %v144_v9, %v143_v8  ;;  %v138_v14 = vld [vmem:[%s848_s29 + $0x20] sm:$0xff]  ;;  %v139_v15 = vld [vmem:[%s848_s29 + $0x28] sm:$0xff]  ;;  %v190_v26 = vmul.f32 %v134_v4, %v134_v4  ;;  %s481_s10 = scalar_lea.sflag [#allocation4], %s844_s22  ;;  %s664_s2 = scalar_lea.vmem %s1109_s25, 16 }
  0x3c   : > { %v137_v13 = vld [vmem:[%s848_s29 + $0x18] sm:$0xff]  ;;  %v150_v19 = vld [vmem:[%s848_s29 + $0x80] sm:$0xff]  ;;  %v147_v23 = vld [vmem:[%s848_s29 + $0x68] sm:$0xff]  ;;  %v194_v25 = vmul.f32 %v138_v14, %v138_v14  ;;  %v195_v35 = vmul.f32 %v139_v15, %v139_v15  ;;  %v222_v43 = vadd.f32 %v197_v33, %v196_v32  ;;  %v199_v45 = vmul.f32 %v143_v8, %v143_v8  ;;  %p665_p6 = scmp.ne.s32.totalorder %s1109_s25, %s664_s2  ;;  %p1158_p11 = scmp.ne.s32.totalorder %s1155_s17, 0 }
  0x3d   : > { %v159_v16 = vadd.f32 %v158_v7, %v136_v6  ;;  %v162_v17 = vadd.f32 %v138_v14, %v137_v13  ;;  %v149_v18 = vld [vmem:[%s848_s29 + $0x78] sm:$0xff]  ;;  %168 = vadd.xlane.f32.xlu1 %v167_v11  ;;  %v171_v20 = vadd.f32 %v170_v12, %v145_v10  ;;  %v146_v22 = vld [vmem:[%s848_s29 + $0x60] sm:$0xff]  ;;  %v193_v24 = vmul.f32 %v137_v13, %v137_v13  ;;  %v151_v29 = vld [vmem:[%s848_s29 + $0x88] sm:$0xff]  ;;  %s735_s3 = smov [#allocation5]  }
  0x3e   : > { %v178_v21 = vadd.f32 %v150_v19, %v149_v18  ;;  %v174_v30 = vadd.f32 %v147_v23, %v146_v22  ;;  %v148_v31 = vld [vmem:[%s848_s29 + $0x70] sm:$0xff]  ;;  %v214_v39 = vadd.f32 %v191_v27, %v190_v26  ;;  %v153_v41 = vld [vmem:[%s848_s29 + $0x98] sm:$0xff]  ;;  %v200_v46 = vmul.f32 %v144_v9, %v144_v9  ;;  %v155_v47 = vld [vmem:[%s848_s29 + $0xa8] sm:$0xff]  ;;  %p666_p12 = pnand %p665_p6, %p1158_p11  ;;  %s668_s4 = sshll.u32 %s735_s3, 4  ;;  %s669_s4 = int_to_ptr.vmem [resolvable:$false] %s668_s4 }
  0x3f   : > { %160 = vadd.xlane.f32.xlu0 %v159_v16  ;;  %v163_v28 = vadd.f32 %v162_v17, %v139_v15  ;;  %v218_v36 = vadd.f32 %v194_v25, %v193_v24  ;;  %v152_v40 = vld [vmem:[%s848_s29 + $0x90] sm:$0xff]  ;;  %v154_v51 = vld [vmem:[%s848_s29 + $0xa0] sm:$0xff]  ;;  %v223_v52 = vadd.f32 %v222_v43, %v198_v42  ;;  %v201_v54 = vmul.f32 %v145_v10, %v145_v10  ;;  %v157_v56 = vld [vmem:[%s848_s29 + $0xb8] sm:$0xff]  ;;  %s670_s5 = scalar_lea.vmem %s669_s4, 32  ;;  %p671_p8 = scmp.lt.s32.totalorder %s1109_s25, %s669_s4 }
  0x40   : > { %v179_v34 = vadd.f32 %v178_v21, %v151_v29  ;;  %v175_v38 = vadd.f32 %v174_v30, %v148_v31  ;;  %v156_v48 = vld [vmem:[%s848_s29 + $0xb0] sm:$0xff]  ;;  %v215_v49 = vadd.f32 %v214_v39, %v192_v37  ;;  %v182_v50 = vadd.f32 %v153_v41, %v152_v40  ;;  %p667_p13 = pneg %p666_p12  ;;  %p672_p10 = scmp.lt.s32.totalorder %s670_s5, %s664_s2 }
  0x41   : > { %172 = vadd.xlane.f32.xlu1 %v171_v20  ;;  %v219_v44 = vadd.f32 %v218_v36, %v195_v35  ;;  %v186_v53 = vadd.f32 %v156_v48, %v155_v47  ;;  %v226_v55 = vadd.f32 %v200_v46, %v199_v45  ;;  %v205_v57 = vmul.f32 %v149_v18, %v149_v18 }
  0x42   : > { %v206_v58 = vmul.f32 %v150_v19, %v150_v19  ;;  %v183_v59 = vadd.f32 %v182_v50, %v154_v51  ;;  %v202_v60 = vmul.f32 %v146_v22, %v146_v22  ;;  %v203_v61 = vmul.f32 %v147_v23, %v147_v23  ;;  %p673_p0 = por %p672_p10, %p671_p8 }
  0x43   : > { %164 = vadd.xlane.f32.xlu0 %v163_v28  ;;  %v187_v62 = vadd.f32 %v186_v53, %v157_v56  ;;  %v207_v63 = vmul.f32 %v151_v29, %v151_v29  ;;  %v227_v0 = vadd.f32 %v226_v55, %v201_v54  ;;  %v211_v2 = vmul.f32 %v155_v47, %v155_v47 }
  0x44   : > { %v234_v1 = vadd.f32 %v206_v58, %v205_v57  ;;  %v212_v3 = vmul.f32 %v156_v48, %v156_v48  ;;  %v204_v4 = vmul.f32 %v148_v31, %v148_v31  ;;  %v230_v5 = vadd.f32 %v203_v61, %v202_v60  ;;  %p674_p2 = pnand %p673_p0, %p667_p13 }
  0x45   : > { %180 = vadd.xlane.f32.xlu1 %v179_v34  ;;  %v208_v6 = vmul.f32 %v152_v40, %v152_v40  ;;  %v209_v7 = vmul.f32 %v153_v41, %v153_v41  ;;  %v213_v9 = vmul.f32 %v157_v56, %v157_v56  ;;  %v210_v12 = vmul.f32 %v154_v51, %v154_v51 }
  0x46   : > { %v235_v8 = vadd.f32 %v234_v1, %v207_v63  ;;  %v242_v10 = vadd.f32 %v212_v3, %v211_v2  ;;  %v231_v11 = vadd.f32 %v230_v5, %v204_v4  ;;  %v358_v26 = vlaneseq }
  0x47   : > { %176 = vadd.xlane.f32.xlu0 %v175_v38  ;;  %v238_v13 = vadd.f32 %v209_v7, %v208_v6  ;;  %vm439_vm8 = vcmask 720512   ;;  %vm446_vm11 = vcmask 786112   ;;  %vm453_vm13 = vcmask 851712  }
  0x48   : > { %v243_v14 = vadd.f32 %v242_v10, %v213_v9  ;;  %v887_v34 = vand.u32 127, %v358_v26  ;;  %v891_v43 = vshrl.u32 %v358_v26, 7 }
  0x49   : > { %220 = vadd.xlane.f32.xlu1 %v219_v44  ;;  %v239_v15 = vadd.f32 %v238_v13, %v210_v12 }
  0x4a   : > { %v894_v44 = vadd.s32 4294967280, %v887_v34  ;;  %v364_v61 = vadd.s32 4294967288, %v887_v34  ;;  %v362_v1 = vsub.s32 %v887_v34, %v891_v43  ;;  %v926_v5 = vadd.s32 4294967264, %v887_v34 }
  0x4b   : > { %216 = vadd.xlane.f32.xlu0 %v215_v49  ;;  %v933_v13 = vadd.s32 4294967256, %v887_v34  ;;  %v943_v26 = vadd.s32 4294967232, %v887_v34 }
  0x4c   : > { %v374_v56 = vsub.s32 %v894_v44, %v891_v43  ;;  %v367_v12 = vsub.s32 %v364_v61, %v891_v43 }
  0x4d   : > { %224 = vadd.xlane.f32.xlu1 %v223_v52  ;;  %v906_v52 = vadd.s32 4294967272, %v887_v34 }
  0x4f   : > { %184 = vadd.xlane.f32.xlu0 %v183_v59  ;;  %v381_v4 = vsub.s32 %v906_v52, %v891_v43 }
  0x51   : > { %228 = vadd.xlane.f32.xlu1 %v227_v0 }
  0x53   : > { %188 = vadd.xlane.f32.xlu0 %v187_v62 }
  0x55   : > { %236 = vadd.xlane.f32.xlu1 %v235_v8 }
  0x57   : > { %232 = vadd.xlane.f32.xlu0 %v231_v11 }
  0x59   : > { %244 = vadd.xlane.f32.xlu1 %v243_v14  ;;  %v936_v14 = vadd.s32 4294967224, %v887_v34 }
  0x5b   : > { %240 = vadd.xlane.f32.xlu0 %v239_v15 }
  0xca   : > { %v169_v16 = vpop.xlane.xlu1 %168 }
  0xcb   : > { %v882_v24 = vmul.f32 0.0026041667, %v169_v16 }
  0xcc   : > { %v161_v17 = vpop.xlane.xlu0 %160 }
  0xcd   : > { %v880_v21 = vmul.f32 0.0026041667, %v161_v17  ;;  %v256_v32 = vmul.f32 %v882_v24, %v169_v16 }
  0xce   : > { %v173_v18 = vpop.xlane.xlu1 %172 }
  0xcf   : > { %v254_v27 = vmul.f32 %v880_v21, %v161_v17  ;;  %v889_v37 = vmul.f32 0.0026041667, %v173_v18 }
  0xd0   : > { %v165_v19 = vpop.xlane.xlu0 %164 }
  0xd1   : > { %v878_v20 = vmul.f32 0.0026041667, %v165_v19  ;;  %v257_v48 = vmul.f32 %v889_v37, %v173_v18 }
  0xd2   : > { %v181_v22 = vpop.xlane.xlu1 %180 }
  0xd3   : > { %v255_v25 = vmul.f32 %v878_v20, %v165_v19  ;;  %v896_v45 = vmul.f32 0.0026041667, %v181_v22 }
  0xd4   : > { %v177_v23 = vpop.xlane.xlu0 %176 }
  0xd5   : > { %v898_v46 = vmul.f32 0.0026041667, %v177_v23  ;;  %v259_v57 = vmul.f32 %v896_v45, %v181_v22 }
  0xd6   : > { %v221_v28 = vpop.xlane.xlu1 %220 }
  0xd7   : > { %v263_v29 = vsub.f32 %v221_v28, %v255_v25  ;;  %v258_v58 = vmul.f32 %v898_v46, %v177_v23  ;;  %v388_v23 = vsub.s32 %v926_v5, %v891_v43  ;;  %v950_v28 = vadd.s32 4294967240, %v887_v34 }
  0xd8   : > { %v217_v30 = vpop.xlane.xlu0 %216 }
  0xd9   : > { %v262_v31 = vsub.f32 %v217_v30, %v254_v27  ;;  %v271_v33 = vmul.f32 0.002610966, %v263_v29  ;;  %v946_v27 = vadd.s32 4294967248, %v887_v34  ;;  %v395_v29 = vsub.s32 %v933_v13, %v891_v43 }
  0xda   : > { %v225_v36 = vpop.xlane.xlu1 %224  ;;  %v955_v30 = vadd.s32 4294967216, %v887_v34  ;;  %v409_v52 = vsub.s32 %v950_v28, %v891_v43 }
  0xdb   : > { %v270_v35 = vmul.f32 0.002610966, %v262_v31  ;;  %v279_v38 = vmax.f32 %v271_v33, 0.0  ;;  %v264_v39 = vsub.f32 %v225_v36, %v256_v32  ;;  %v430_v33 = vsub.s32 %v936_v14, %v891_v43 }
  0xdc   : > { %v185_v40 = vpop.xlane.xlu0 %184 }
  0xdd   : > { %v278_v41 = vmax.f32 %v270_v35, 0.0  ;;  %v272_v42 = vmul.f32 0.002610966, %v264_v39  ;;  %v901_v49 = vadd.f32 1e-08, %v279_v38  ;;  %v964_v35 = vadd.s32 4294967208, %v887_v34 }
  0xde   : > { %v229_v47 = vpop.xlane.xlu1 %228  ;;  %v914_v59 = vmul.f32 0.0026041667, %v185_v40 }
  0xdf   : > { %v903_v51 = vadd.f32 1e-08, %v278_v41  ;;  %v280_v53 = vmax.f32 %v272_v42, 0.0  ;;  %v265_v54 = vsub.f32 %v229_v47, %v257_v48  ;;  %618 = vrsqrt.f32 %v901_v49 }
  0xe0   : > { %v189_v50 = vpop.xlane.xlu0 %188  ;;  %v260_v7 = vmul.f32 %v914_v59, %v185_v40  ;;  %v368_v40 = vrot.slane %v878_v20, %v367_v12  ;;  %v969_v41 = vadd.s32 4294967200, %v887_v34  ;;  %v972_v42 = vadd.s32 4294967192, %v887_v34 }
  0xe1   : > { %v908_v55 = vmul.f32 0.0026041667, %v189_v50  ;;  %v918_v62 = vadd.f32 1e-08, %v280_v53  ;;  %v273_v63 = vmul.f32 0.002610966, %v265_v54  ;;  %620 = vrsqrt.f32 %v903_v51 }
  0xe2   : > { %v237_v60 = vpop.xlane.xlu1 %236  ;;  %v425_v48 = vsub.s32 %v943_v26, %v891_v43  ;;  %v981_v20 = vadd.s32 4294967184, %v887_v34  ;;  %v363_v54 = vrot.slane %v880_v21, %v362_v1  ;;  %v444_v61 = vsub.s32 %v964_v35, %v891_v43 }
  0xe3   : > { %v267_v2 = vsub.f32 %v237_v60, %v259_v57  ;;  %622 = vrsqrt.f32 %v918_v62  ;;  %v261_v6 = vmul.f32 %v908_v55, %v189_v50  ;;  %v281_v8 = vmax.f32 %v273_v63, 0.0 }
  0xe4   : > { %v233_v0 = vpop.xlane.xlu0 %232  ;;  %v402_v50 = vsub.s32 %v946_v27, %v891_v43  ;;  %v437_v57 = vsub.s32 %v955_v30, %v891_v43  ;;  %v451_v1 = vsub.s32 %v969_v41, %v891_v43  ;;  %vm303_vm3 = vcmp.eq.f32.partialorder %v901_v49, inf }
  0xe5   : > { %v266_v3 = vsub.f32 %v233_v0, %v258_v58  ;;  %v275_v9 = vmul.f32 0.002610966, %v267_v2  ;;  %v938_v17 = vadd.f32 1e-08, %v281_v8  ;;  %v988_v58 = vadd.s32 4294967176, %v887_v34 }
  0xe6   : > { %v245_v11 = vpop.xlane.xlu1 %244  ;;  %v370_v2 = vsel %vm369_vm0, %v368_v40, %v363_v54  ;;  %v375_v34 = vrot.slane %v882_v24, %v374_v56  ;;  %v382_v8 = vrot.slane %v889_v37, %v381_v4  ;;  %v306_v56 = vand.u32 2147483648, %v901_v49 }
  0xe7   : > { %v274_v10 = vmul.f32 0.002610966, %v266_v3  ;;  %v269_v15 = vsub.f32 %v245_v11, %v261_v6  ;;  %v283_v18 = vmax.f32 %v275_v9, 0.0  ;;  %624 = vrsqrt.f32 %v938_v17 }
  0xe8   : > { %v241_v16 = vpop.xlane.xlu0 %240  ;;  %v458_v3 = vsub.s32 %v972_v42, %v891_v43  ;;  %v377_v44 = vsel %vm376_vm1, %v375_v34, %v370_v2  ;;  %vm296_vm4 = vcmp.eq.f32.partialorder %v903_v51, inf  ;;  %vm310_vm7 = vcmp.eq.f32.partialorder %v918_v62, inf }
  0xe9   : > { %v282_v19 = vmax.f32 %v274_v10, 0.0  ;;  %v268_v22 = vsub.f32 %v241_v16, %v260_v7  ;;  %v277_v25 = vmul.f32 0.002610966, %v269_v15  ;;  %v957_v31 = vadd.f32 1e-08, %v283_v18  ;;  %v619_v39 = vpop.eup %618 }
  0xea   : > { %v302_v60 = vmul.f32 %v619_v39, %v901_v49  ;;  %v465_v7 = vsub.s32 %v981_v20, %v891_v43  ;;  %v472_v10 = vsub.s32 %v988_v58, %v891_v43  ;;  %vm305_vm9 = vcmp.eq.f32.partialorder %v901_v49, 0.0 }
  0xeb   : > { %v959_v32 = vadd.f32 1e-08, %v282_v19  ;;  %v285_v36 = vmax.f32 %v277_v25, 0.0  ;;  %v276_v38 = vmul.f32 0.002610966, %v268_v22  ;;  %626 = vrsqrt.f32 %v957_v31  ;;  %v621_v47 = vpop.eup %620 }
  0xec   : > { %v295_v21 = vmul.f32 %v621_v47, %v903_v51  ;;  %v304_v24 = vsel %vm303_vm3, %v901_v49, %v302_v60  ;;  %v299_v12 = vand.u32 2147483648, %v903_v51  ;;  %vm317_vm10 = vcmp.eq.f32.partialorder %v938_v17, inf }
  0xed   : > { %v623_v53 = vpop.eup %622  ;;  %628 = vrsqrt.f32 %v959_v32  ;;  %v993_v63 = vadd.f32 1e-08, %v285_v36  ;;  %v284_v0 = vmax.f32 %v276_v38, 0.0  ;;  %v307_v18 = vsel %vm305_vm9, %v306_v56, %v304_v24 }
  0xee   : > { %v309_v6 = vmul.f32 %v623_v53, %v918_v62  ;;  %v297_v37 = vsel %vm296_vm4, %v903_v51, %v295_v21  ;;  %vm298_vm12 = vcmp.eq.f32.partialorder %v903_v51, 0.0  ;;  %v313_v19 = vand.u32 2147483648, %v918_v62 }
  0xef   : > { %630 = vrsqrt.f32 %v993_v63  ;;  %v1011_v9 = vadd.f32 1e-08, %v284_v0  ;;  %v300_v25 = vsel %vm298_vm12, %v299_v12, %v297_v37  ;;  %vm312_vm14 = vcmp.eq.f32.partialorder %v918_v62, 0.0 }
  0xf0   : > { %v311_v15 = vsel %vm310_vm7, %v918_v62, %v309_v6  ;;  %v320_v49 = vand.u32 2147483648, %v938_v17  ;;  %v384_v39 = vsel %vm383_vm2, %v382_v8, %v377_v44  ;;  %v389_v51 = vrot.slane %v898_v46, %v388_v23 }
  0xf1   : > { %v625_v11 = vpop.eup %624  ;;  %632 = vrsqrt.f32 %v1011_v9  ;;  %v314_v40 = vsel %vm312_vm14, %v313_v19, %v311_v15  ;;  %vm319_vm15 = vcmp.eq.f32.partialorder %v938_v17, 0.0  ;;  %v431_v47 = vrot.slane %v307_v18, %v430_v33 }
  0xf2   : > { %v316_v4 = vmul.f32 %v625_v11, %v938_v17  ;;  %vm397_vm0 = vcmask 392512   ;;  %vm331_vm1 = vcmp.eq.f32.partialorder %v957_v31, inf  ;;  %vm460_vm3 = vcmask 917312  }
  0xf3   : > { %v426_v5 = vrot.slane %v300_v25, %v425_v48  ;;  %vm404_vm2 = vcmask 458112   ;;  %vm324_vm4 = vcmp.eq.f32.partialorder %v959_v32, inf  ;;  %v438_v23 = vrot.slane %v314_v40, %v437_v57 }
  0xf4   : > { %v318_v22 = vsel %vm317_vm10, %v938_v17, %v316_v4  ;;  %v327_v17 = vand.u32 2147483648, %v959_v32  ;;  %v334_v33 = vand.u32 2147483648, %v957_v31  ;;  %vm326_vm7 = vcmp.eq.f32.partialorder %v959_v32, 0.0 }
  0xf5   : > { %v627_v16 = vpop.eup %626  ;;  %v321_v62 = vsel %vm319_vm15, %v320_v49, %v318_v22  ;;  %vm333_vm9 = vcmp.eq.f32.partialorder %v957_v31, 0.0  ;;  %vm345_vm10 = vcmp.eq.f32.partialorder %v993_v63, inf  ;;  %v348_v30 = vand.u32 2147483648, %v993_v63 }
  0xf6   : > { %v330_v36 = vmul.f32 %v627_v16, %v957_v31  ;;  %v445_v26 = vrot.slane %v321_v62, %v444_v61  ;;  %vm347_vm12 = vcmp.eq.f32.partialorder %v993_v63, 0.0  ;;  %v433_v35 = vsel %vm432_vm5, %v431_v47, %v426_v5 }
  0xf7   : > { %v629_v38 = vpop.eup %628  ;;  %v391_v61 = vsel %vm390_vm6, %v389_v51, %v384_v39  ;;  %v440_v41 = vsel %vm439_vm8, %v438_v23, %v433_v35  ;;  %vm338_vm14 = vcmp.eq.f32.partialorder %v1011_v9, inf  ;;  %v341_v13 = vand.u32 2147483648, %v1011_v9 }
  0xf8   : > { %v323_v53 = vmul.f32 %v629_v38, %v959_v32  ;;  %v332_v46 = vsel %vm331_vm1, %v957_v31, %v330_v36  ;;  %vm340_vm5 = vcmp.eq.f32.partialorder %v1011_v9, 0.0  ;;  %v410_v8 = vrot.slane %v908_v55, %v409_v52 }
  0xf9   : > { %v631_v14 = vpop.eup %630  ;;  %v335_v57 = vsel %vm333_vm9, %v334_v33, %v332_v46  ;;  %vm467_vm6 = vcmask 982912   ;;  %vm411_vm8 = vcmask 523712  }
  0xfa   : > { %v325_v54 = vsel %vm324_vm4, %v959_v32, %v323_v53  ;;  %v344_v60 = vmul.f32 %v631_v14, %v993_v63  ;;  %v396_v32 = vrot.slane %v896_v45, %v395_v29  ;;  %v447_v45 = vsel %vm446_vm11, %v445_v26, %v440_v41 }
  0xfb   : > { %v328_v48 = vsel %vm326_vm7, %v327_v17, %v325_v54  ;;  %v633_v2 = vpop.eup %632  ;;  %v459_v29 = vrot.slane %v335_v57, %v458_v3  ;;  %vm474_vm11 = vcmask 1048512  }
  0xfc   : > { %v452_v0 = vrot.slane %v328_v48, %v451_v1  ;;  %v346_v31 = vsel %vm345_vm10, %v993_v63, %v344_v60  ;;  %v337_v21 = vmul.f32 %v633_v2, %v1011_v9  ;;  %v403_v63 = vrot.slane %v914_v59, %v402_v50 }
  0xfd   : > { %v349_v34 = vsel %vm347_vm12, %v348_v30, %v346_v31  ;;  %v398_v27 = vsel %vm397_vm0, %v396_v32, %v391_v61 }
  0xfe   : > { %v339_v1 = vsel %vm338_vm14, %v1011_v9, %v337_v21  ;;  %v454_v6 = vsel %vm453_vm13, %v452_v0, %v447_v45  ;;  %v473_v42 = vrot.slane %v349_v34, %v472_v10  ;;  %vm477_vm13 = vcmask 523264  }
  0xff   : > { %v342_v11 = vsel %vm340_vm5, %v341_v13, %v339_v1  ;;  %v461_v55 = vsel %vm460_vm3, %v459_v29, %v454_v6  ;;  %v405_v28 = vsel %vm404_vm2, %v403_v63, %v398_v27 }
 0x100   : > { %v466_v59 = vrot.slane %v342_v11, %v465_v7  ;;  %v412_v52 = vsel %vm411_vm8, %v410_v8, %v405_v28 }
 0x102   : > { %v468_v50 = vsel %vm467_vm6, %v466_v59, %v461_v55 }
 0x103   : > { %v475_v58 = vsel %vm474_vm11, %v473_v42, %v468_v50 }
 0x104   : > { %v478_v43 = vsel %vm477_vm13, %v412_v52, %v475_v58 }
 0x105   : > { %479 = vst [vmem:[%s133_s24] sm:$0x1] %v478_v43 }
 0x106   : > { %677 = shalt.err (!%p674_p2)
}
 0x107   : > { %s678_s11 = scalar_lea.hbm %s1107_s30, 16  ;;  %s682_s19 = scalar_lea.hbm %s1152_s1, 32 }
 0x108   : > { %p679_p4 = scmp.ne.s32.totalorder %s1107_s30, %s678_s11  ;;  %p683_p9 = scmp.lt.u32.totalorder %s1107_s30, %s1152_s1 }
 0x109   : > { %p684_p1 = scmp.lt.u32.totalorder %s682_s19, %s678_s11  ;;  %p686_p6 = scmp.lt.u32.totalorder %s678_s11, %s1107_s30 }
 0x10a   : > { %p680_p5 = pnand %p679_p4, %p1158_p11 }
 0x10b   : > { %p685_p3 = por %p684_p1, %p683_p9 }
 0x10c   : > { %p681_p7 = pneg %p680_p5 }
 0x10d   : > { %p687_p12 = por %p686_p6, %p685_p3 }
 0x10f   : > { %p688_p13 = pnand %p687_p12, %p681_p7 }
 0x111   : > { %691 = shalt.err (!%p688_p13)
}
 0x112   : > { %572 = dma.vmem_to_hbm [thread:$0]  (%p1158_p11), %s1109_s25, 16, %s1107_s30, %s481_s10  }
 0x113 PF: > { %s505_s22 = sand.u32 1, %s718_s6   ;;  %p1159_p8 = scmp.ne.s32.totalorder %s1156_s18, 0 }
 0x114   : > { %p1160_p10 = scmp.ge.s32.totalorder %s730_s9, 2  ;;  %s506_s23 = scalar_lea.sflag [#allocation4], %s505_s22 }
 0x116   : > { %p579_p0 = pnand %p1160_p10, %p1159_p8 }
 0x118   : > { %713 = dma.done.wait (!%p579_p0), %s506_s23, 16  }
 0x119   : > { %715 = vsyncadd (!%p579_p0), %s506_s23, 4294967280  ;;  %p14_p2 = scmp.ge.s32.totalorder %s771_s12, 4   ;;  %s1161_s6 = smov %s722_s7 }
 0x11a   : > { %s1162_s7 = smov %s726_s8  ;;  %s1163_s8 = smov %s783_s15 }
 0x11b   : > { %s1164_s9 = smov %s771_s12  ;;  %16 = sbr.rel (!%p14_p2) target bundleno = 5 (0x5), region = 69 }
 0x122   :  { %510 = vsyncpa [#allocation3], 1 }
 0x123   :  { %512 = vsyncpa [#allocation3 + $0x1], 1 }
 0x124   :  { %513 = vsyncpa [#allocation4], 1 }
 0x125   :  { %515 = vsyncpa [#allocation4 + $0x1], 1 }

</bundles_post_ra>
